<compile_context>
chip_gen: v5e
topology: v5e:2x2
jax: 0.10.0
libtpu: 0.0.40
codegen_flags: <defaults>
</compile_context>

<pallas_src>
import functools

import jax
import jax.numpy as jnp
from jax.experimental import pallas as pl
from jax.experimental.pallas import tpu as pltpu


def _trimmed_mae_kernel(pred_ref, targ_ref, mask_ref,
                        num_out_ref, den_out_ref,
                        num_acc, den_acc,
                        *, rows_total, row_tile, steps):
    """Grid = (partitions, steps).  Axis 0 is 'parallel' (per-partition partial
    sums, sharded across TensorCores where available); axis 1 is the serial
    reduction over that partition's row tiles, carried in VMEM accumulators."""
    pi = pl.program_id(0)
    si = pl.program_id(1)

    @pl.when(si == 0)
    def _():
        num_acc[...] = jnp.zeros_like(num_acc)
        den_acc[...] = jnp.zeros_like(den_acc)

    p = pred_ref[...].astype(jnp.float32)
    t = targ_ref[...].astype(jnp.float32)
    m = mask_ref[...].astype(jnp.float32)

    # Validity mask for rows beyond the logical end (remainder block / clamped
    # duplicate block).  jnp.where is a select, so garbage (even NaN/Inf) in
    # out-of-bounds rows never propagates.
    blk = pi * steps + si                       # logical (unclamped) block id
    row0 = blk * row_tile
    row_ids = row0 + jax.lax.broadcasted_iota(jnp.int32, (row_tile, 1), 0)
    valid = row_ids < rows_total                # (row_tile, 1) bool

    absdiff = jnp.abs(p - t)
    # Reference selects residuals where mask != 0 (UNweighted numerator) and
    # divides by 2 * sum(mask values).
    sel = jnp.logical_and(valid, m != 0.0)
    num_acc[...] += jnp.where(sel, absdiff, 0.0)
    den_acc[...] += jnp.where(valid, m, 0.0)

    @pl.when(si == pl.num_programs(1) - 1)
    def _():
        # Single cross-lane reduce per partition, broadcast into a lane-dense
        # (1, 8, 128) output tile; wrapper reads element [0, 0].
        num_out_ref[...] = jnp.full(num_out_ref.shape, jnp.sum(num_acc[...]),
                                    jnp.float32)
        den_out_ref[...] = jnp.full(den_out_ref.shape, jnp.sum(den_acc[...]),
                                    jnp.float32)


def trimmed_mae_loss(prediction, target, mask, trim=0.2, *,
                     row_tile=None, max_parts=2):
    """prediction, target, mask: (B, H, W) (any float dtype; bool mask ok).
    Returns scalar float32 loss = sum(|p-t| over mask!=0) / (2 * sum(mask))."""
    del trim  # see note above: reference code's trimming is a no-op

    # bool masks: stream as int8 (4x fewer bytes than f32), widen in-kernel.
    if mask.dtype == jnp.bool_:
        mask = mask.astype(jnp.int8)

    W = prediction.shape[-1]
    p2 = prediction.reshape(-1, W)   # free reshape (contiguous)
    t2 = target.reshape(-1, W)
    m2 = mask.reshape(-1, W)
    R = p2.shape[0]

    if row_tile is None:
        rt = (1 << 20) // (W * 4)                  # ~1 MiB f32 per block
        rt = max(32, min(2048, (rt // 32) * 32))   # multiple of 32 (int8-safe)
    else:
        rt = row_tile
    if rt >= R:
        rt = R                                     # single full-extent block

    n_blocks = pl.cdiv(R, rt)
    num_parts = max_parts if n_blocks >= max_parts else 1
    steps = pl.cdiv(n_blocks, num_parts)

    kernel = functools.partial(_trimmed_mae_kernel,
                               rows_total=R, row_tile=rt, steps=steps)

    def in_map(pi, si):
        # Clamp logically-extra blocks (odd n_blocks split over partitions) to
        # a valid block; their rows are fully masked out in the kernel.
        return (jnp.minimum(pi * steps + si, n_blocks - 1), 0)

    in_spec = pl.BlockSpec((rt, W), in_map)
    out_spec = pl.BlockSpec((1, 8, 128), lambda pi, si: (pi, 0, 0))

    num_p, den_p = pl.pallas_call(
        kernel,
        out_shape=(
            jax.ShapeDtypeStruct((num_parts, 8, 128), jnp.float32),
            jax.ShapeDtypeStruct((num_parts, 8, 128), jnp.float32),
        ),
        grid_spec=pltpu.PrefetchScalarGridSpec(
            num_scalar_prefetch=0,
            grid=(num_parts, steps),
            in_specs=[in_spec, in_spec, in_spec],
            out_specs=(out_spec, out_spec),
            scratch_shapes=[
                pltpu.VMEM((rt, W), jnp.float32),   # numerator accumulator
                pltpu.VMEM((rt, W), jnp.float32),   # denominator accumulator
            ],
        ),
        compiler_params=pltpu.CompilerParams(
            dimension_semantics=("parallel", "arbitrary"),
        ),
    )(p2, t2, m2)

    num_total = jnp.sum(num_p[:, 0, 0])
    den_total = jnp.sum(den_p[:, 0, 0])
    # Same behavior as the PyTorch reference: sum(mask)==0 -> inf/nan.
    return num_total / (2.0 * den_total)


class TrimmedMAELoss:
    """JAX/Pallas equivalent of util.Loss_MiDas.TrimmedMAELoss (no params)."""

    def __init__(self, reduction="batch-based"):
        self.reduction = reduction

    def __call__(self, prediction, target, mask):
        return trimmed_mae_loss(prediction, target, mask)


def _ref_loss(prediction, target, mask):
    # Plain-JAX reference of the exact PyTorch-code semantics.
    m = mask.astype(jnp.float32)
    num = jnp.sum(jnp.where(m != 0.0,
                            jnp.abs(prediction.astype(jnp.float32)
                                    - target.astype(jnp.float32)),
                            0.0))
    return num / (2.0 * jnp.sum(m))


if __name__ == "__main__":
    loss_fn = TrimmedMAELoss()

    # --- Test 1: small canonical case (B, H, W) = (2, 16, 16), float mask ---
    B, H, W = 2, 16, 16
    key = jax.random.PRNGKey(0)
    kp, kt, km = jax.random.split(key, 3)
    prediction = jax.random.normal(kp, (B, H, W), dtype=jnp.float32)
    target = jax.random.normal(kt, (B, H, W), dtype=jnp.float32)
    mask = (jax.random.uniform(km, (B, H, W)) > 0.3).astype(jnp.float32)

    loss = jax.block_until_ready(loss_fn(prediction, target, mask))
    ref = _ref_loss(prediction, target, mask)
    assert jnp.allclose(loss, ref, rtol=1e-5, atol=1e-6), (loss, ref)

    # --- Test 2: odd shapes + bool mask (full-extent single block path) ---
    B2, H2, W2 = 1, 13, 20
    k2p, k2t, k2m = jax.random.split(jax.random.PRNGKey(0), 3)
    p_b = jax.random.normal(k2p, (B2, H2, W2), dtype=jnp.float32)
    t_b = jax.random.normal(k2t, (B2, H2, W2), dtype=jnp.float32)
    m_b = jax.random.uniform(k2m, (B2, H2, W2)) > 0.5
    loss2 = jax.block_until_ready(trimmed_mae_loss(p_b, t_b, m_b))
    ref2 = _ref_loss(p_b, t_b, m_b)
    assert jnp.allclose(loss2, ref2, rtol=1e-5, atol=1e-6), (loss2, ref2)

    # --- Test 3: multi-block, odd block count, remainder rows (forced tile) ---
    B3, H3, W3 = 5, 16, 128          # R = 80 rows, rt = 32 -> 3 blocks, 2 parts
    k3p, k3t, k3m = jax.random.split(jax.random.PRNGKey(0), 3)
    p_c = jax.random.normal(k3p, (B3, H3, W3), dtype=jnp.float32)
    t_c = jax.random.normal(k3t, (B3, H3, W3), dtype=jnp.float32)
    m_c = (jax.random.uniform(k3m, (B3, H3, W3)) > 0.3).astype(jnp.float32)
    loss3 = jax.block_until_ready(trimmed_mae_loss(p_c, t_c, m_c, row_tile=32))
    ref3 = _ref_loss(p_c, t_c, m_c)
    assert jnp.allclose(loss3, ref3, rtol=1e-5, atol=1e-6), (loss3, ref3)

    print("KERNEL_OK")
</pallas_src>

<mosaic_0001>
module attributes {stable_mosaic.version = 11 : i64} {
  func.func @_trimmed_mae_kernel(%arg0: i32, %arg1: i32, %arg2: memref<32x16xf32, #tpu.memory_space<vmem>>, %arg3: memref<32x16xf32, #tpu.memory_space<vmem>>, %arg4: memref<32x16xf32, #tpu.memory_space<vmem>>, %arg5: memref<1x8x128xf32, #tpu.memory_space<vmem>>, %arg6: memref<1x8x128xf32, #tpu.memory_space<vmem>>, %arg7: memref<32x16xf32, #tpu.memory_space<vmem>>, %arg8: memref<32x16xf32, #tpu.memory_space<vmem>>) attributes {dimension_semantics = [#tpu.dimension_semantics<parallel>, #tpu.dimension_semantics<arbitrary>], iteration_bounds = array<i64: 1, 1>, scalar_prefetch = 0 : i64, scratch_operands = 2 : i64, tpu.core_type = #tpu.core_type<tc>, window_params = [{transform_indices = @transform_0, window_bounds = array<i64: 32, 16>}, {transform_indices = @transform_1, window_bounds = array<i64: 32, 16>}, {transform_indices = @transform_2, window_bounds = array<i64: 32, 16>}, {transform_indices = @transform_3, window_bounds = array<i64: 1, 8, 128>}, {transform_indices = @transform_4, window_bounds = array<i64: 1, 8, 128>}]} {
    %c0_i32 = arith.constant 0 : i32
    %0 = arith.cmpi eq, %arg1, %c0_i32 : i32
    %1 = arith.extui %0 : i1 to i32
    %c0_i32_0 = arith.constant 0 : i32
    %2 = arith.cmpi ne, %1, %c0_i32_0 : i32
    scf.if %2 {
      %cst_19 = arith.constant 0.000000e+00 : f32
      %35 = vector.broadcast %cst_19 : f32 to vector<32x16xf32>
      %c0_20 = arith.constant 0 : index
      %c0_21 = arith.constant 0 : index
      %36 = vector.load %arg7[%c0_20, %c0_21] : memref<32x16xf32, #tpu.memory_space<vmem>>, vector<32x16xf32>
      tpu.vector_store %arg7[%c0_20, %c0_21], %35 {strides = array<i32>} : memref<32x16xf32, #tpu.memory_space<vmem>>, vector<32x16xf32>,
      %cst_22 = arith.constant 0.000000e+00 : f32
      %37 = vector.broadcast %cst_22 : f32 to vector<32x16xf32>
      %c0_23 = arith.constant 0 : index
      %c0_24 = arith.constant 0 : index
      %38 = vector.load %arg8[%c0_23, %c0_24] : memref<32x16xf32, #tpu.memory_space<vmem>>, vector<32x16xf32>
      tpu.vector_store %arg8[%c0_23, %c0_24], %37 {strides = array<i32>} : memref<32x16xf32, #tpu.memory_space<vmem>>, vector<32x16xf32>,
    } else {
    }
    %c0 = arith.constant 0 : index
    %c0_1 = arith.constant 0 : index
    %3 = vector.load %arg2[%c0, %c0_1] : memref<32x16xf32, #tpu.memory_space<vmem>>, vector<32x16xf32>
    %c0_2 = arith.constant 0 : index
    %c0_3 = arith.constant 0 : index
    %4 = vector.load %arg3[%c0_2, %c0_3] : memref<32x16xf32, #tpu.memory_space<vmem>>, vector<32x16xf32>
    %c0_4 = arith.constant 0 : index
    %c0_5 = arith.constant 0 : index
    %5 = vector.load %arg4[%c0_4, %c0_5] : memref<32x16xf32, #tpu.memory_space<vmem>>, vector<32x16xf32>
    %c1_i32 = arith.constant 1 : i32
    %6 = arith.muli %arg0, %c1_i32 : i32
    %7 = arith.addi %6, %arg1 : i32
    %c32_i32 = arith.constant 32 : i32
    %8 = arith.muli %7, %c32_i32 : i32
    %9 = tpu.iota {dimensions = array<i32: 0>} : vector<32x1xi32>
    %10 = vector.broadcast %8 : i32 to vector<32x1xi32>
    %11 = arith.addi %10, %9 : vector<32x1xi32>
    %c32_i32_6 = arith.constant 32 : i32
    %12 = vector.broadcast %c32_i32_6 : i32 to vector<32x1xi32>
    %13 = arith.cmpi slt, %11, %12 : vector<32x1xi32>
    %14 = arith.subf %3, %4 : vector<32x16xf32>
    %15 = math.absf %14 : vector<32x16xf32>
    %cst = arith.constant 0.000000e+00 : f32
    %16 = vector.broadcast %cst : f32 to vector<32x16xf32>
    %17 = arith.cmpf one, %5, %16 : vector<32x16xf32>
    %18 = vector.broadcast %13 : vector<32x1xi1> to vector<32x16xi1>
    %19 = arith.andi %18, %17 : vector<32x16xi1>
    %c0_7 = arith.constant 0 : index
    %c0_8 = arith.constant 0 : index
    %20 = vector.load %arg7[%c0_7, %c0_8] : memref<32x16xf32, #tpu.memory_space<vmem>>, vector<32x16xf32>
    %cst_9 = arith.constant 0.000000e+00 : f32
    %21 = vector.broadcast %cst_9 : f32 to vector<32x16xf32>
    %22 = arith.select %19, %15, %21 : vector<32x16xi1>, vector<32x16xf32>
    %23 = arith.addf %20, %22 : vector<32x16xf32>
    %c0_10 = arith.constant 0 : index
    %c0_11 = arith.constant 0 : index
    %24 = vector.load %arg7[%c0_10, %c0_11] : memref<32x16xf32, #tpu.memory_space<vmem>>, vector<32x16xf32>
    tpu.vector_store %arg7[%c0_10, %c0_11], %23 {strides = array<i32>} : memref<32x16xf32, #tpu.memory_space<vmem>>, vector<32x16xf32>,
    %c0_12 = arith.constant 0 : index
    %c0_13 = arith.constant 0 : index
    %25 = vector.load %arg8[%c0_12, %c0_13] : memref<32x16xf32, #tpu.memory_space<vmem>>, vector<32x16xf32>
    %cst_14 = arith.constant 0.000000e+00 : f32
    %26 = vector.shape_cast %13 : vector<32x1xi1> to vector<32x1xi1>
    %27 = vector.broadcast %26 : vector<32x1xi1> to vector<32x16xi1>
    %28 = vector.broadcast %cst_14 : f32 to vector<32x16xf32>
    %29 = arith.select %27, %5, %28 : vector<32x16xi1>, vector<32x16xf32>
    %30 = arith.addf %25, %29 : vector<32x16xf32>
    %c0_15 = arith.constant 0 : index
    %c0_16 = arith.constant 0 : index
    %31 = vector.load %arg8[%c0_15, %c0_16] : memref<32x16xf32, #tpu.memory_space<vmem>>, vector<32x16xf32>
    tpu.vector_store %arg8[%c0_15, %c0_16], %30 {strides = array<i32>} : memref<32x16xf32, #tpu.memory_space<vmem>>, vector<32x16xf32>,
    %c0_i32_17 = arith.constant 0 : i32
    %32 = arith.cmpi eq, %arg1, %c0_i32_17 : i32
    %33 = arith.extui %32 : i1 to i32
    %c0_i32_18 = arith.constant 0 : i32
    %34 = arith.cmpi ne, %33, %c0_i32_18 : i32
    scf.if %34 {
      %c0_19 = arith.constant 0 : index
      %c0_20 = arith.constant 0 : index
      %35 = vector.load %arg7[%c0_19, %c0_20] : memref<32x16xf32, #tpu.memory_space<vmem>>, vector<32x16xf32>
      %36 = vector.shape_cast %35 : vector<32x16xf32> to vector<1x32x16xf32>
      %cst_21 = arith.constant dense<0.000000e+00> : vector<1xf32>
      %37 = vector.multi_reduction <add>, %36, %cst_21 [1, 2] : vector<1x32x16xf32> to vector<1xf32>
      %38 = vector.shape_cast %37 : vector<1xf32> to vector<1x1x1xf32>
      %39 = vector.extract %38[0, 0, 0] : f32 from vector<1x1x1xf32>
      %40 = vector.broadcast %39 : f32 to vector<1x8x128xf32>
      %c0_22 = arith.constant 0 : index
      %c0_23 = arith.constant 0 : index
      %c0_24 = arith.constant 0 : index
      %41 = vector.load %arg5[%c0_22, %c0_23, %c0_24] : memref<1x8x128xf32, #tpu.memory_space<vmem>>, vector<1x8x128xf32>
      tpu.vector_store %arg5[%c0_22, %c0_23, %c0_24], %40 {strides = array<i32>} : memref<1x8x128xf32, #tpu.memory_space<vmem>>, vector<1x8x128xf32>,
      %c0_25 = arith.constant 0 : index
      %c0_26 = arith.constant 0 : index
      %42 = vector.load %arg8[%c0_25, %c0_26] : memref<32x16xf32, #tpu.memory_space<vmem>>, vector<32x16xf32>
      %43 = vector.shape_cast %42 : vector<32x16xf32> to vector<1x32x16xf32>
      %cst_27 = arith.constant dense<0.000000e+00> : vector<1xf32>
      %44 = vector.multi_reduction <add>, %43, %cst_27 [1, 2] : vector<1x32x16xf32> to vector<1xf32>
      %45 = vector.shape_cast %44 : vector<1xf32> to vector<1x1x1xf32>
      %46 = vector.extract %45[0, 0, 0] : f32 from vector<1x1x1xf32>
      %47 = vector.broadcast %46 : f32 to vector<1x8x128xf32>
      %c0_28 = arith.constant 0 : index
      %c0_29 = arith.constant 0 : index
      %c0_30 = arith.constant 0 : index
      %48 = vector.load %arg6[%c0_28, %c0_29, %c0_30] : memref<1x8x128xf32, #tpu.memory_space<vmem>>, vector<1x8x128xf32>
      tpu.vector_store %arg6[%c0_28, %c0_29, %c0_30], %47 {strides = array<i32>} : memref<1x8x128xf32, #tpu.memory_space<vmem>>, vector<1x8x128xf32>,
    } else {
    }
    return
  }
  func.func @transform_0(%arg0: i32, %arg1: i32) -> (i32, i32) {
    %c1_i32 = arith.constant 1 : i32
    %0 = arith.muli %arg0, %c1_i32 : i32
    %1 = arith.addi %0, %arg1 : i32
    %c0_i32 = arith.constant 0 : i32
    %2 = arith.minsi %1, %c0_i32 : i32
    %c0_i32_0 = arith.constant 0 : i32
    %c0_i32_1 = arith.constant 0 : i32
    return %2, %c0_i32_0 : i32, i32
  }
  func.func @transform_1(%arg0: i32, %arg1: i32) -> (i32, i32) {
    %c1_i32 = arith.constant 1 : i32
    %0 = arith.muli %arg0, %c1_i32 : i32
    %1 = arith.addi %0, %arg1 : i32
    %c0_i32 = arith.constant 0 : i32
    %2 = arith.minsi %1, %c0_i32 : i32
    %c0_i32_0 = arith.constant 0 : i32
    %c0_i32_1 = arith.constant 0 : i32
    return %2, %c0_i32_0 : i32, i32
  }
  func.func @transform_2(%arg0: i32, %arg1: i32) -> (i32, i32) {
    %c1_i32 = arith.constant 1 : i32
    %0 = arith.muli %arg0, %c1_i32 : i32
    %1 = arith.addi %0, %arg1 : i32
    %c0_i32 = arith.constant 0 : i32
    %2 = arith.minsi %1, %c0_i32 : i32
    %c0_i32_0 = arith.constant 0 : i32
    %c0_i32_1 = arith.constant 0 : i32
    return %2, %c0_i32_0 : i32, i32
  }
  func.func @transform_3(%arg0: i32, %arg1: i32) -> (i32, i32, i32) {
    %c0_i32 = arith.constant 0 : i32
    %c0_i32_0 = arith.constant 0 : i32
    %c0_i32_1 = arith.constant 0 : i32
    return %arg0, %c0_i32, %c0_i32_0 : i32, i32, i32
  }
  func.func @transform_4(%arg0: i32, %arg1: i32) -> (i32, i32, i32) {
    %c0_i32 = arith.constant 0 : i32
    %c0_i32_0 = arith.constant 0 : i32
    %c0_i32_1 = arith.constant 0 : i32
    return %arg0, %c0_i32, %c0_i32_0 : i32, i32, i32
  }
}

</mosaic_0001>

<bundles_post_ra>
// kernel: tpu_custom_call.1
= control target key start
LH: loop header
LB: loop body
LE: loop exit
PB: predicated region body
PF: predicated region fallthrough
CT: control target
= control target key end

     0   :  { %10 = vsyncpa [#allocation5], 0  ;;  %vm118_vm0 = vcmask 130048   ;;  %v368_v3 = vmov 0.0   ;;  %s462_s0 = inlined_call_operand.vmem [shape: f32[32,16], index: 0, kind: input, shape index: {}]   ;;  %s463_s1 = inlined_call_operand.vmem [shape: f32[32,16], index: 1, kind: input, shape index: {}]   ;;  %s464_s2 = inlined_call_operand.vmem [shape: f32[32,16], index: 2, kind: input, shape index: {}]   ;;  %s465_s3 = inlined_call_operand.hbm [shape: f32[1,8,128], index: 3, kind: output, shape index: {0}]   ;;  %s466_s4 = inlined_call_operand.hbm [shape: f32[1,8,128], index: 4, kind: output, shape index: {1}]  }
   0x1   :  { %v127_v0 = vld [vmem:[%s462_s0] sm:$0xff]  ;;  %v128_v1 = vld [vmem:[%s462_s0 + $0x8] sm:$0xff]  ;;  %v129_v2 = vld [vmem:[%s462_s0 + $0x10] sm:$0xff]  ;;  %119 = vst.msk [vmem:[#allocation2] sm:$0xff] %vm118_vm0, %v368_v3 }
   0x2   :  { %v130_v4 = vld [vmem:[%s462_s0 + $0x18] sm:$0xff]  ;;  %v131_v5 = vld [vmem:[%s463_s1] sm:$0xff]  ;;  %v132_v6 = vld [vmem:[%s463_s1 + $0x8] sm:$0xff]  ;;  %120 = vst.msk [vmem:[#allocation2 + $0x8] sm:$0xff] %vm118_vm0, %v368_v3 }
   0x3   :  { %v133_v7 = vld [vmem:[%s463_s1 + $0x10] sm:$0xff]  ;;  %v134_v8 = vld [vmem:[%s463_s1 + $0x18] sm:$0xff]  ;;  %v135_v9 = vld [vmem:[%s464_s2] sm:$0xff]  ;;  %v155_v10 = vsub.f32 %v127_v0, %v131_v5  ;;  %v156_v11 = vsub.f32 %v128_v1, %v132_v6  ;;  %121 = vst.msk [vmem:[#allocation2 + $0x10] sm:$0xff] %vm118_vm0, %v368_v3 }
   0x4   :  { %v136_v12 = vld [vmem:[%s464_s2 + $0x8] sm:$0xff]  ;;  %v137_v13 = vld [vmem:[%s464_s2 + $0x10] sm:$0xff]  ;;  %v138_v14 = vld [vmem:[%s464_s2 + $0x18] sm:$0xff]  ;;  %v157_v15 = vsub.f32 %v129_v2, %v133_v7  ;;  %v158_v16 = vsub.f32 %v130_v4, %v134_v8  ;;  %vm163_vm1 = vcmp.ne.f32.partialorder %v135_v9, 0.0  ;;  %122 = vst.msk [vmem:[#allocation2 + $0x18] sm:$0xff] %vm118_vm0, %v368_v3 }
   0x5   :  { %v159_v17 = vand.u32 2147483647, %v155_v10  ;;  %v160_v18 = vand.u32 2147483647, %v156_v11  ;;  %vm164_vm2 = vcmp.ne.f32.partialorder %v136_v12, 0.0  ;;  %vm165_vm3 = vcmp.ne.f32.partialorder %v137_v13, 0.0 }
   0x6   :  { %v161_v19 = vand.u32 2147483647, %v157_v15  ;;  %v162_v20 = vand.u32 2147483647, %v158_v16  ;;  %vm166_vm4 = vcmp.ne.f32.partialorder %v138_v14, 0.0  ;;  %123 = vst.msk [vmem:[#allocation3] sm:$0xff] %vm118_vm0, %v368_v3 }
   0x7   :  { %v183_v21 = vsel %vm163_vm1, %v159_v17, 0.0 }
   0x8   :  { %11 = vsyncpa [#allocation7], 0  ;;  %v184_v22 = vsel %vm164_vm2, %v160_v18, 0.0  ;;  %124 = vst.msk [vmem:[#allocation3 + $0x8] sm:$0xff] %vm118_vm0, %v368_v3  ;;  %v179_v23 = vld [vmem:[#allocation2] sm:$0xff]  ;;  %v185_v24 = vsel %vm165_vm3, %v161_v19, 0.0 }
   0x9   :  { %125 = vst.msk [vmem:[#allocation3 + $0x10] sm:$0xff] %vm118_vm0, %v368_v3  ;;  %v180_v25 = vld [vmem:[#allocation2 + $0x8] sm:$0xff]  ;;  %v186_v26 = vsel %vm166_vm4, %v162_v20, 0.0  ;;  %v187_v27 = vadd.f32 %v183_v21, %v179_v23  ;;  %s369_s1 = smov [#allocation4]   ;;  %s266_s14 = sshll.u32 %s465_s3, 4  ;;  %s267_s14 = int_to_ptr.hbm [resolvable:$true] %s266_s14 }
   0xa   :  { %126 = vst.msk [vmem:[#allocation3 + $0x18] sm:$0xff] %vm118_vm0, %v368_v3  ;;  %v181_v28 = vld [vmem:[#allocation2 + $0x10] sm:$0xff]  ;;  %v188_v29 = vadd.f32 %v184_v22, %v180_v25  ;;  %s264_s2 = sshll.u32 %s369_s1, 4  ;;  %s370_s16 = smov [#allocation6]   ;;  %s265_s2 = int_to_ptr.vmem [resolvable:$true] %s264_s2 }
   0xb   :  { %v182_v30 = vld [vmem:[#allocation2 + $0x18] sm:$0xff]  ;;  %v189_v31 = vadd.f32 %v185_v24, %v181_v28  ;;  %192 = vst.msk [vmem:[#allocation2] sm:$0xff] %vm118_vm0, %v187_v27  ;;  %s275_s17 = sshll.u32 %s370_s16, 4  ;;  %s277_s20 = sshll.u32 %s466_s4, 4  ;;  %s276_s17 = int_to_ptr.vmem [resolvable:$true] %s275_s17  ;;  %s278_s20 = int_to_ptr.hbm [resolvable:$true] %s277_s20 }
   0xc   :  { %v190_v32 = vadd.f32 %v186_v26, %v182_v30  ;;  %193 = vst.msk [vmem:[#allocation2 + $0x8] sm:$0xff] %vm118_vm0, %v188_v29 }
   0xd   :  { %194 = vst.msk [vmem:[#allocation2 + $0x10] sm:$0xff] %vm118_vm0, %v189_v31  ;;  %v196_v33 = vld [vmem:[#allocation3] sm:$0xff] }
   0xe   :  { %195 = vst.msk [vmem:[#allocation2 + $0x18] sm:$0xff] %vm118_vm0, %v190_v32  ;;  %v204_v35 = vadd.f32 %v196_v33, %v135_v9 }
   0xf   :  { %v197_v34 = vld [vmem:[#allocation3 + $0x8] sm:$0xff] }
  0x10   :  { %v198_v36 = vld [vmem:[#allocation3 + $0x10] sm:$0xff]  ;;  %v205_v37 = vadd.f32 %v197_v34, %v136_v12  ;;  %208 = vst.msk [vmem:[#allocation3] sm:$0xff] %vm118_vm0, %v204_v35 }
  0x11   :  { %v199_v38 = vld [vmem:[#allocation3 + $0x18] sm:$0xff]  ;;  %v206_v39 = vadd.f32 %v198_v36, %v137_v13 }
  0x12   :  { %v207_v40 = vadd.f32 %v199_v38, %v138_v14  ;;  %209 = vst.msk [vmem:[#allocation3 + $0x8] sm:$0xff] %vm118_vm0, %v205_v37  ;;  %v215_v41 = vld [vmem:[#allocation2] sm:$0xff] }
  0x13   :  { %210 = vst.msk [vmem:[#allocation3 + $0x10] sm:$0xff] %vm118_vm0, %v206_v39  ;;  %v216_v42 = vld [vmem:[#allocation2 + $0x8] sm:$0xff]  ;;  %v219_v43 = vsel %vm118_vm0, %v215_v41, 0.0 }
  0x14   :  { %211 = vst.msk [vmem:[#allocation3 + $0x18] sm:$0xff] %vm118_vm0, %v207_v40  ;;  %v217_v44 = vld [vmem:[#allocation2 + $0x10] sm:$0xff]  ;;  %v220_v45 = vsel %vm118_vm0, %v216_v42, 0.0 }
  0x15   :  { %v218_v46 = vld [vmem:[#allocation2 + $0x18] sm:$0xff]  ;;  %v221_v47 = vadd.f32 %v220_v45, %v219_v43  ;;  %v222_v48 = vsel %vm118_vm0, %v217_v44, 0.0 }
  0x16   :  { %v224_v49 = vsel %vm118_vm0, %v218_v46, 0.0 }
  0x17   :  { %v223_v50 = vadd.f32 %v222_v48, %v221_v47  ;;  %v237_v51 = vld [vmem:[#allocation3] sm:$0xff] }
  0x18   :  { %v241_v53 = vsel %vm118_vm0, %v237_v51, 0.0 }
  0x19   :  { %v238_v52 = vld [vmem:[#allocation3 + $0x8] sm:$0xff]  ;;  %v225_v54 = vadd.f32 %v224_v49, %v223_v50 }
  0x1a   :  { %v239_v55 = vld [vmem:[#allocation3 + $0x10] sm:$0xff]  ;;  %v242_v56 = vsel %vm118_vm0, %v238_v52, 0.0 }
  0x1b   :  { %v240_v57 = vld [vmem:[#allocation3 + $0x18] sm:$0xff]  ;;  %v243_v58 = vadd.f32 %v242_v56, %v241_v53  ;;  %v244_v59 = vsel %vm118_vm0, %v239_v55, 0.0  ;;  %226 = vadd.xlane.f32.xlu0 %v225_v54 }
  0x1c   :  { %v246_v61 = vsel %vm118_vm0, %v240_v57, 0.0 }
  0x1d   :  { %v245_v60 = vadd.f32 %v244_v59, %v243_v58 }
  0x1f   :  { %v247_v62 = vadd.f32 %v246_v61, %v245_v60 }
  0x23   :  { %248 = vadd.xlane.f32.xlu0 %v247_v62 }
  0x8e   :  { %v227_v63 = vpop.xlane.xlu0 %226 }
  0x8f   :  { %v228_v0 = vrot.slane %v227_v63, 4 }
  0x91   :  { %v229_v1 = vadd.f32 %v228_v0, %v227_v63 }
  0x93   :  { %v230_v2 = vrot.slane %v229_v1, 2 }
  0x95   :  { %v231_v3 = vadd.f32 %v230_v2, %v229_v1 }
  0x96   :  { %v249_v4 = vpop.xlane.xlu0 %248 }
  0x97   :  { %v250_v5 = vrot.slane %v249_v4, 4  ;;  %v232_v6 = vrot.slane %v231_v3, 1 }
  0x99   :  { %v251_v7 = vadd.f32 %v250_v5, %v249_v4  ;;  %v233_v8 = vadd.f32 %v232_v6, %v231_v3 }
  0x9b   :  { %v252_v9 = vrot.slane %v251_v7, 2  ;;  %309 = vpush %v233_v8 }
  0x9d   :  { %v253_v10 = vadd.f32 %v252_v9, %v251_v7 }
  0x9f   :  { %v254_v11 = vrot.slane %v253_v10, 1 }
  0xa1   :  { %v255_v12 = vadd.f32 %v254_v11, %v253_v10 }
  0xa3   :  { %311 = vpush %v255_v12 }
  0xcc   :  { %s310_s15 = spop %309 }
  0xcd   :  { %v235_v13 = vstv %s310_s15 }
  0xce   :  { %236 = vst [vmem:[#allocation4] sm:$0xff] %v235_v13 }
  0xcf   :  { %269 = dma.vmem_to_hbm [thread:$0]  %s265_s2, 128, %s267_s14, [#allocation5]  }
  0xd4   :  { %s312_s21 = spop %311 }
  0xd5   :  { %v257_v14 = vstv %s312_s21 }
  0xd6   :  { %258 = vst [vmem:[#allocation6] sm:$0xff] %v257_v14 }
  0xd7   :  { %280 = dma.vmem_to_hbm [thread:$0]  %s276_s17, 128, %s278_s20, [#allocation7]  }
  0xd8   :  { %364 = dma.done.wait [#allocation5], 128  }
  0xd9   :  { %365 = vsyncadd [#allocation5], 4294967168 }
  0xda   :  { %366 = dma.done.wait [#allocation7], 128  }
  0xdb   :  { %367 = vsyncadd [#allocation7], 4294967168 }
  0xdc   :  { %289 = vsyncpa [#allocation5], 1 }
  0xdd   :  { %290 = vsyncpa [#allocation7], 1 }

</bundles_post_ra>
